<compile_context>
chip_gen: v5e
topology: v5e:2x2
jax: 0.10.0
libtpu: 0.0.40
codegen_flags: <defaults>
</compile_context>

<pallas_src>
import math

import jax
import jax.numpy as jnp
from jax.experimental import pallas as pl
from jax.experimental.pallas import tpu as pltpu


def _round_up(x: int, m: int) -> int:
    return (x + m - 1) // m * m


def _vmem_plan():
    """(budget, scoped-limit, max tile rows) for the current TPU generation."""
    try:
        phys = int(pltpu.get_tpu_info().vmem_capacity_bytes)
    except Exception:
        phys = 64 * 1024 * 1024          # conservative default = v7x (smallest VMEM)
    budget = int(phys * 0.60)            # steady-state double-buffered working set
    limit = int(phys * 0.78)             # scoped-VMEM limit handed to Mosaic
    max_rows = 1024 if phys >= 96 * 1024 * 1024 else 512
    return budget, limit, max_rows


def _make_kernel(tb, tc, b, c, mask_rows, mask_cols, clamp):
    """Build the loss kernel closed over the static tiling parameters."""

    def kernel(s_ref, t_ref, o_ref):
        j = pl.program_id(0)             # class-tile index (outer, independent)
        i = pl.program_id(1)             # batch-tile index (inner, reduction)

        @pl.when(i == 0)
        def _init():
            o_ref[...] = jnp.zeros_like(o_ref)

        xs = s_ref[...].astype(jnp.float32)
        xt = t_ref[...].astype(jnp.float32)

        # Mask padded rows/cols of partial edge tiles BEFORE the transcendental math:
        # OOB block contents are undefined (stale VMEM), and NaN*0 = NaN.
        if mask_rows or mask_cols:
            valid = None
            if mask_rows:
                row = jax.lax.broadcasted_iota(jnp.int32, (tb, tc), 0) + i * tb
                valid = row < b
            if mask_cols:
                col = jax.lax.broadcasted_iota(jnp.int32, (tb, tc), 1) + j * tc
                cvalid = col < c
                valid = cvalid if valid is None else (valid & cvalid)
            xs = jnp.where(valid, xs, 0.0)
            xt = jnp.where(valid, xt, 0.0)

        # eps clamp on probabilities == clamp on logits at +/- log((1-eps)/eps).
        if clamp is not None:
            xs = jnp.clip(xs, -clamp, clamp)
            xt = jnp.clip(xt, -clamp, clamp)

        # Exact stable form of t*log(t/s) + (1-t)*log((1-t)/(1-s)):
        #   loss = sigmoid(x_t)*(x_t - x_s) + softplus(x_s) - softplus(x_t)
        # exp(-|x_t|) is shared between sigmoid and softplus (5 EUP ops / element).
        e_t = jnp.exp(-jnp.abs(xt))
        softplus_t = jnp.maximum(xt, 0.0) + jnp.log1p(e_t)
        sig_t = jnp.where(xt >= 0.0, 1.0, e_t) * pl.reciprocal(1.0 + e_t, approx=True)
        softplus_s = jnp.maximum(xs, 0.0) + jnp.log1p(jnp.exp(-jnp.abs(xs)))
        loss = sig_t * (xt - xs) + softplus_s - softplus_t

        # Fold the (tb, tc) tile into the resident (8, tc) output accumulator:
        # summing over the leading sub-block axis is pure VALU work (no XLU).
        if tb == 8:
            o_ref[...] += loss
        else:
            o_ref[...] += jnp.sum(loss.reshape(tb // 8, 8, tc), axis=0)

    return kernel


def multi_label_distillation_loss(student_logits, teacher_logits,
                                  reduction: str = "batchmean",
                                  eps: float = 1e-8,
                                  _max_tile_rows=None):
    """Pallas TPU implementation of MultiLabelDistillationLoss.forward."""
    assert student_logits.shape == teacher_logits.shape
    assert student_logits.ndim == 2
    b, c = student_logits.shape

    if reduction == "batchmean":
        denom = float(b)
    elif reduction == "mean":
        denom = float(b * c)
    elif reduction == "sum":
        denom = 1.0
    else:
        # TODO(synk): reduction='none' (elementwise (B, C) output) is not wired up.
        raise ValueError(f"unsupported reduction: {reduction}")

    budget, vmem_limit, max_rows = _vmem_plan()
    if _max_tile_rows is not None:
        max_rows = max(8, _round_up(int(_max_tile_rows), 8))

    in_bytes = int(student_logits.dtype.itemsize) + int(teacher_logits.dtype.itemsize)

    def footprint(tb_, tc_):
        # double-buffered input tiles + (generously 2x) the (8, tc) f32 accumulator
        return 2 * tb_ * tc_ * in_bytes + 2 * 8 * tc_ * 4

    # Class tiling only when even a minimal 8-row tile over all classes won't fit.
    if footprint(8, c) <= budget:
        tc = c
    else:
        per_col = 2 * 8 * in_bytes + 2 * 8 * 4
        tc = max(128, (budget // per_col) // 128 * 128)
    n_col = pl.cdiv(c, tc)

    # Grow the row tile as far as the VMEM budget (and the batch) allows.
    rows_wanted = min(max_rows, _round_up(b, 8))
    per_row = 2 * tc * in_bytes
    fixed = 2 * 8 * tc * 4
    row_cap = ((budget - fixed) // max(per_row, 1)) // 8 * 8
    tb = max(8, min(rows_wanted, row_cap))
    n_row = pl.cdiv(b, tb)

    mask_rows = (b % tb) != 0
    mask_cols = (c % tc) != 0
    clamp = math.log((1.0 - eps) / eps) if 0.0 < eps < 0.5 else None

    kernel = _make_kernel(tb, tc, b, c, mask_rows, mask_cols, clamp)

    out = pl.pallas_call(
        kernel,
        out_shape=jax.ShapeDtypeStruct((8, c), jnp.float32),
        grid=(n_col, n_row),
        in_specs=[
            pl.BlockSpec((tb, tc), lambda j, i: (i, j)),
            pl.BlockSpec((tb, tc), lambda j, i: (i, j)),
        ],
        out_specs=pl.BlockSpec((8, tc), lambda j, i: (0, j)),
        compiler_params=pltpu.CompilerParams(
            dimension_semantics=("parallel", "arbitrary"),
            vmem_limit_bytes=vmem_limit,
        ),
    )(student_logits, teacher_logits)

    # (8, C) partial sums -> scalar; trivial XLA reduce outside the kernel.
    return jnp.sum(out) / jnp.float32(denom)


def _reference(student_logits, teacher_logits, reduction="batchmean", eps=1e-8):
    """Pure-JAX transcription of the PyTorch module (clamped form)."""
    s = jnp.clip(jax.nn.sigmoid(student_logits.astype(jnp.float32)), eps, 1.0 - eps)
    t = jnp.clip(jax.nn.sigmoid(teacher_logits.astype(jnp.float32)), eps, 1.0 - eps)
    loss = (t * (jnp.log(t) - jnp.log(s))
            + (1.0 - t) * (jnp.log(1.0 - t) - jnp.log(1.0 - s)))
    if reduction == "batchmean":
        return jnp.sum(loss) / student_logits.shape[0]
    if reduction == "mean":
        return jnp.mean(loss)
    return jnp.sum(loss)


if __name__ == "__main__":
    key = jax.random.PRNGKey(0)
    k1, k2 = jax.random.split(key)

    # Non-multiple-of-8 batch and non-multiple-of-128 class count exercise the
    # in-kernel edge-masking path (no wrapper-side padding).
    batch, num_classes = 6, 206
    student = jax.random.normal(k1, (batch, num_classes), jnp.float32) * 2.0
    teacher = jax.random.normal(k2, (batch, num_classes), jnp.float32) * 2.0

    # Tolerances account for pl.reciprocal(approx=True) in the sigmoid denominator.
    for reduction in ("batchmean", "mean", "sum"):
        out = jax.block_until_ready(
            multi_label_distillation_loss(student, teacher, reduction=reduction))
        ref = _reference(student, teacher, reduction=reduction)
        assert jnp.allclose(out, ref, rtol=5e-3, atol=5e-3), (reduction, out, ref)

    # Multi-step accumulation path: tb > 8 (sub-block fold), n_row > 1, partial
    # last row tile masked in-kernel.
    k3, k4 = jax.random.split(k2)
    batch2 = 44
    s2 = jax.random.normal(k3, (batch2, num_classes), jnp.float32) * 2.0
    t2 = jax.random.normal(k4, (batch2, num_classes), jnp.float32) * 2.0
    out2 = jax.block_until_ready(
        multi_label_distillation_loss(s2, t2, _max_tile_rows=16))
    ref2 = _reference(s2, t2)
    assert jnp.allclose(out2, ref2, rtol=5e-3, atol=5e-3), (out2, ref2)

    # bf16 inputs stream at half the HBM bytes; math is still f32 inside the kernel.
    student_bf16 = student.astype(jnp.bfloat16)
    teacher_bf16 = teacher.astype(jnp.bfloat16)
    out_bf16 = jax.block_until_ready(
        multi_label_distillation_loss(student_bf16, teacher_bf16))
    ref_bf16 = _reference(student_bf16, teacher_bf16)
    assert jnp.allclose(out_bf16, ref_bf16, rtol=1e-2, atol=1e-2), (out_bf16, ref_bf16)

    print("KERNEL_OK")
</pallas_src>

<mosaic_0001>
module attributes {stable_mosaic.version = 11 : i64} {
  func.func @kernel(%arg0: i32, %arg1: i32, %arg2: memref<8x206xf32, #tpu.memory_space<vmem>>, %arg3: memref<8x206xf32, #tpu.memory_space<vmem>>, %arg4: memref<8x206xf32, #tpu.memory_space<vmem>>) attributes {dimension_semantics = [#tpu.dimension_semantics<parallel>, #tpu.dimension_semantics<arbitrary>], iteration_bounds = array<i64: 1, 1>, scalar_prefetch = 0 : i64, scratch_operands = 0 : i64, tpu.core_type = #tpu.core_type<tc>, window_params = [{transform_indices = @transform_0, window_bounds = array<i64: 8, 206>}, {transform_indices = @transform_1, window_bounds = array<i64: 8, 206>}, {transform_indices = @transform_2, window_bounds = array<i64: 8, 206>}]} {
    %c0_i32 = arith.constant 0 : i32
    %0 = arith.cmpi eq, %arg1, %c0_i32 : i32
    %1 = arith.extui %0 : i1 to i32
    %c0_i32_0 = arith.constant 0 : i32
    %2 = arith.cmpi ne, %1, %c0_i32_0 : i32
    scf.if %2 {
      %cst_20 = arith.constant 0.000000e+00 : f32
      %54 = vector.broadcast %cst_20 : f32 to vector<8x206xf32>
      %c0_21 = arith.constant 0 : index
      %c0_22 = arith.constant 0 : index
      %55 = vector.load %arg4[%c0_21, %c0_22] : memref<8x206xf32, #tpu.memory_space<vmem>>, vector<8x206xf32>
      tpu.vector_store %arg4[%c0_21, %c0_22], %54 {strides = array<i32>} : memref<8x206xf32, #tpu.memory_space<vmem>>, vector<8x206xf32>,
    } else {
    }
    %c0 = arith.constant 0 : index
    %c0_1 = arith.constant 0 : index
    %3 = vector.load %arg2[%c0, %c0_1] : memref<8x206xf32, #tpu.memory_space<vmem>>, vector<8x206xf32>
    %c0_2 = arith.constant 0 : index
    %c0_3 = arith.constant 0 : index
    %4 = vector.load %arg3[%c0_2, %c0_3] : memref<8x206xf32, #tpu.memory_space<vmem>>, vector<8x206xf32>
    %5 = tpu.iota {dimensions = array<i32: 0>} : vector<8x206xi32>
    %c8_i32 = arith.constant 8 : i32
    %6 = arith.muli %arg1, %c8_i32 : i32
    %7 = vector.broadcast %6 : i32 to vector<8x206xi32>
    %8 = arith.addi %5, %7 : vector<8x206xi32>
    %c6_i32 = arith.constant 6 : i32
    %9 = vector.broadcast %c6_i32 : i32 to vector<8x206xi32>
    %10 = arith.cmpi slt, %8, %9 : vector<8x206xi32>
    %cst = arith.constant 0.000000e+00 : f32
    %11 = vector.broadcast %cst : f32 to vector<8x206xf32>
    %12 = arith.select %10, %3, %11 : vector<8x206xi1>, vector<8x206xf32>
    %cst_4 = arith.constant 0.000000e+00 : f32
    %13 = vector.broadcast %cst_4 : f32 to vector<8x206xf32>
    %14 = arith.select %10, %4, %13 : vector<8x206xi1>, vector<8x206xf32>
    %cst_5 = arith.constant -18.420681 : f32
    %cst_6 = arith.constant 18.420681 : f32
    %15 = vector.broadcast %cst_5 : f32 to vector<8x206xf32>
    %16 = arith.maximumf %15, %12 : vector<8x206xf32>
    %17 = vector.broadcast %cst_6 : f32 to vector<8x206xf32>
    %18 = arith.minimumf %17, %16 : vector<8x206xf32>
    %cst_7 = arith.constant -18.420681 : f32
    %cst_8 = arith.constant 18.420681 : f32
    %19 = vector.broadcast %cst_7 : f32 to vector<8x206xf32>
    %20 = arith.maximumf %19, %14 : vector<8x206xf32>
    %21 = vector.broadcast %cst_8 : f32 to vector<8x206xf32>
    %22 = arith.minimumf %21, %20 : vector<8x206xf32>
    %23 = math.absf %22 : vector<8x206xf32>
    %cst_9 = arith.constant 0.000000e+00 : f32
    %24 = vector.broadcast %cst_9 : f32 to vector<8x206xf32>
    %25 = arith.subf %24, %23 : vector<8x206xf32>
    %26 = math.exp %25 : vector<8x206xf32>
    %cst_10 = arith.constant 0.000000e+00 : f32
    %27 = vector.broadcast %cst_10 : f32 to vector<8x206xf32>
    %28 = arith.maximumf %22, %27 : vector<8x206xf32>
    %29 = math.log1p %26 : vector<8x206xf32>
    %30 = arith.addf %28, %29 : vector<8x206xf32>
    %cst_11 = arith.constant 0.000000e+00 : f32
    %31 = vector.broadcast %cst_11 : f32 to vector<8x206xf32>
    %32 = arith.cmpf oge, %22, %31 : vector<8x206xf32>
    %cst_12 = arith.constant 1.000000e+00 : f32
    %33 = vector.broadcast %cst_12 : f32 to vector<8x206xf32>
    %34 = arith.select %32, %33, %26 : vector<8x206xi1>, vector<8x206xf32>
    %cst_13 = arith.constant 1.000000e+00 : f32
    %35 = vector.broadcast %cst_13 : f32 to vector<8x206xf32>
    %36 = arith.addf %35, %26 : vector<8x206xf32>
    %37 = tpu.reciprocal %36 {approx = true} : vector<8x206xf32> -> vector<8x206xf32>
    %38 = arith.mulf %34, %37 : vector<8x206xf32>
    %cst_14 = arith.constant 0.000000e+00 : f32
    %39 = vector.broadcast %cst_14 : f32 to vector<8x206xf32>
    %40 = arith.maximumf %18, %39 : vector<8x206xf32>
    %41 = math.absf %18 : vector<8x206xf32>
    %cst_15 = arith.constant 0.000000e+00 : f32
    %42 = vector.broadcast %cst_15 : f32 to vector<8x206xf32>
    %43 = arith.subf %42, %41 : vector<8x206xf32>
    %44 = math.exp %43 : vector<8x206xf32>
    %45 = math.log1p %44 : vector<8x206xf32>
    %46 = arith.addf %40, %45 : vector<8x206xf32>
    %47 = arith.subf %22, %18 : vector<8x206xf32>
    %48 = arith.mulf %38, %47 : vector<8x206xf32>
    %49 = arith.addf %48, %46 : vector<8x206xf32>
    %50 = arith.subf %49, %30 : vector<8x206xf32>
    %c0_16 = arith.constant 0 : index
    %c0_17 = arith.constant 0 : index
    %51 = vector.load %arg4[%c0_16, %c0_17] : memref<8x206xf32, #tpu.memory_space<vmem>>, vector<8x206xf32>
    %52 = arith.addf %51, %50 : vector<8x206xf32>
    %c0_18 = arith.constant 0 : index
    %c0_19 = arith.constant 0 : index
    %53 = vector.load %arg4[%c0_18, %c0_19] : memref<8x206xf32, #tpu.memory_space<vmem>>, vector<8x206xf32>
    tpu.vector_store %arg4[%c0_18, %c0_19], %52 {strides = array<i32>} : memref<8x206xf32, #tpu.memory_space<vmem>>, vector<8x206xf32>,
    return
  }
  func.func @transform_0(%arg0: i32, %arg1: i32) -> (i32, i32) {
    %c0_i32 = arith.constant 0 : i32
    return %arg1, %arg0 : i32, i32
  }
  func.func @transform_1(%arg0: i32, %arg1: i32) -> (i32, i32) {
    %c0_i32 = arith.constant 0 : i32
    return %arg1, %arg0 : i32, i32
  }
  func.func @transform_2(%arg0: i32, %arg1: i32) -> (i32, i32) {
    %c0_i32 = arith.constant 0 : i32
    %c0_i32_0 = arith.constant 0 : i32
    return %c0_i32, %arg0 : i32, i32
  }
}

</mosaic_0001>

<bundles_post_ra>
// kernel: tpu_custom_call.1
= control target key start
LH: loop header
LB: loop body
LE: loop exit
PB: predicated region body
PF: predicated region fallthrough
CT: control target
= control target key end

     0   :  { %7 = vsyncpa [#allocation3], 0  ;;  %s350_s0 = inlined_call_operand.hbm [shape: f32[6,206], index: 0, kind: input, shape index: {}]   ;;  %s351_s1 = inlined_call_operand.hbm [shape: f32[6,206], index: 1, kind: input, shape index: {}]   ;;  %s352_s2 = inlined_call_operand.hbm [shape: f32[8,206], index: 2, kind: output, shape index: {}]  }
   0x1   :  { %8 = vsyncpa [#allocation6], 0 }
   0x2   :  { %9 = vsyncpa [#allocation4], 0  ;;  %s15_s11 = sshll.u32 %s350_s0, 4  ;;  %s278_s12 = smov [#allocation2]   ;;  %s16_s11 = int_to_ptr.hbm [resolvable:$true] %s15_s11 }
   0x3   :  { %s17_s13 = sshll.u32 %s278_s12, 4  ;;  %s26_s16 = sshll.u32 %s351_s1, 4  ;;  %s18_s13 = int_to_ptr.vmem [resolvable:$true] %s17_s13  ;;  %s27_s16 = int_to_ptr.hbm [resolvable:$true] %s26_s16 }
   0x4   :  { %20 = dma.hbm_to_vmem [thread:$0]  %s16_s11, 256, %s18_s13, [#allocation3]  }
   0x5   :  { %s279_s17 = smov [#allocation5]  }
   0x6   :  { %s28_s18 = sshll.u32 %s279_s17, 4  ;;  %s29_s18 = int_to_ptr.vmem [resolvable:$true] %s28_s18 }
   0x7   :  { %31 = dma.hbm_to_vmem [thread:$0]  %s27_s16, 256, %s29_s18, [#allocation6]  }
   0x8   :  { %272 = dma.done.wait [#allocation3], 256  }
   0x9   :  { %273 = vsyncadd [#allocation3], 4294967040 }
   0xa   :  { %274 = dma.done.wait [#allocation6], 256  }
   0xb   :  { %275 = vsyncadd [#allocation6], 4294967040  ;;  %vm45_vm0 = vcmask 637952   ;;  %v51_v0 = vlaneseq  ;;  %v280_v1 = vmov 0.0   ;;  %v47_v3 = vld [vmem:[#allocation2] sm:$0xff]  ;;  %v49_v4 = vld [vmem:[#allocation5] sm:$0xff] }
   0xc   :  { %46 = vst.msk [vmem:[#allocation7 + $0x8] sm:$0xff] %vm45_vm0, %v280_v1  ;;  %v48_v5 = vld [vmem:[#allocation2 + $0x8] sm:$0xff]  ;;  %v50_v8 = vld [vmem:[#allocation5 + $0x8] sm:$0xff]  ;;  %s281_s0 = smov [#allocation7]   ;;  %s161_s21 = sshll.u32 %s352_s2, 4  ;;  %s162_s21 = int_to_ptr.hbm [resolvable:$true] %s161_s21 }
   0xd   :  { %v52_v2 = vshrl.u32 %v51_v0, 7  ;;  %s159_s1 = sshll.u32 %s281_s0, 4  ;;  %s160_s1 = int_to_ptr.vmem [resolvable:$true] %s159_s1 }
   0xf   :  { %vm56_vm1 = vcmp.lt.s32.totalorder %v52_v2, 6 }
  0x10   :  { %v57_v6 = vsel %vm56_vm1, %v47_v3, 0.0  ;;  %v59_v7 = vsel %vm56_vm1, %v49_v4, 0.0  ;;  %v58_v9 = vsel %vm56_vm1, %v48_v5, 0.0  ;;  %v60_v12 = vsel %vm56_vm1, %v50_v8, 0.0 }
  0x11   :  { %v304_v10 = vclamps-f32 %v57_v6, 18.420681  ;;  %v306_v11 = vclamps-f32 %v59_v7, 18.420681  ;;  %v308_v13 = vclamps-f32 %v58_v9, 18.420681 }
  0x12   :  { %v310_v14 = vclamps-f32 %v60_v12, 18.420681 }
  0x13   :  { %v69_v15 = vand.u32 2147483647, %v306_v11  ;;  %v111_v16 = vand.u32 2147483647, %v304_v10  ;;  %v112_v19 = vand.u32 2147483647, %v308_v13  ;;  %v139_v50 = vsub.f32 %v306_v11, %v304_v10 }
  0x14   :  { %v70_v17 = vand.u32 2147483647, %v310_v14  ;;  %vm99_vm2 = vcmp.ge.f32.partialorder %v306_v11, 0.0  ;;  %vm100_vm3 = vcmp.ge.f32.partialorder %v310_v14, 0.0  ;;  %v77_v48 = vmax.f32 %v306_v11, 0.0 }
  0x15   :  { %v71_v18 = vsub.f32 0.0, %v69_v15  ;;  %v113_v20 = vsub.f32 0.0, %v111_v16  ;;  %v114_v23 = vsub.f32 0.0, %v112_v19  ;;  %v109_v54 = vmax.f32 %v304_v10, 0.0 }
  0x16   :  { %v72_v21 = vsub.f32 0.0, %v70_v17  ;;  %v140_v2 = vsub.f32 %v310_v14, %v308_v13  ;;  %v78_v5 = vmax.f32 %v310_v14, 0.0  ;;  %v110_v11 = vmax.f32 %v308_v13, 0.0 }
  0x17   :  { %v73_v22 = vmul.f32 1.442695, %v71_v18  ;;  %v115_v24 = vmul.f32 1.442695, %v113_v20  ;;  %v117_v26 = vmul.f32 1.442695, %v114_v23 }
  0x18   :  { %v75_v25 = vmul.f32 1.442695, %v72_v21 }
  0x19   :  { %180 = vpow2.f32 %v73_v22 }
  0x1a   :  { %182 = vpow2.f32 %v115_v24  ;;  %v148_v24 = vld [vmem:[#allocation7 + $0x8] sm:$0xff] }
  0x1b   :  { %184 = vpow2.f32 %v75_v25 }
  0x1c   :  { %186 = vpow2.f32 %v117_v26 }
  0x1f   :  { %v181_v27 = vpop.eup %180 }
  0x20   :  { %v183_v28 = vpop.eup %182  ;;  %v79_v29 = vadd.f32 1.0, %v181_v27  ;;  %v82_v30 = vmul.f32 -0.5, %v181_v27  ;;  %v85_v38 = vand.u32 2147483647, %v181_v27  ;;  %v101_v45 = vsel %vm99_vm2, 1.0, %v181_v27 }
  0x21   :  { %v185_v31 = vpop.eup %184  ;;  %v119_v32 = vadd.f32 1.0, %v183_v28  ;;  %v122_v33 = vmul.f32 -0.5, %v183_v28  ;;  %v125_v41 = vand.u32 2147483647, %v183_v28 }
  0x22   :  { %v187_v34 = vpop.eup %186  ;;  %188 = vlog2.f32 %v79_v29  ;;  %v88_v35 = vadd.f32 1.0, %v185_v31  ;;  %v83_v36 = vadd.f32 1.0, %v82_v30  ;;  %v91_v37 = vmul.f32 -0.5, %v185_v31 }
  0x23   :  { %190 = vrcp.f32 %v79_v29  ;;  %v123_v39 = vadd.f32 1.0, %v122_v33  ;;  %v128_v40 = vadd.f32 1.0, %v187_v34  ;;  %v131_v43 = vmul.f32 -0.5, %v187_v34 }
  0x24   :  { %192 = vlog2.f32 %v119_v32  ;;  %v92_v42 = vadd.f32 1.0, %v91_v37  ;;  %v84_v44 = vmul.f32 %v181_v27, %v83_v36  ;;  %v94_v46 = vand.u32 2147483647, %v185_v31 }
  0x25   :  { %194 = vlog2.f32 %v88_v35  ;;  %vm319_vm4 = vcmp.lt.f32.partialorder %v85_v38, 0.0004427343  ;;  %v132_v51 = vadd.f32 1.0, %v131_v43  ;;  %v124_v55 = vmul.f32 %v183_v28, %v123_v39 }
  0x26   :  { %196 = vrcp.f32 %v88_v35  ;;  %v134_v56 = vand.u32 2147483647, %v187_v34  ;;  %vm326_vm5 = vcmp.lt.f32.partialorder %v125_v41, 0.0004427343  ;;  %v93_v60 = vmul.f32 %v185_v31, %v92_v42 }
  0x27   :  { %198 = vlog2.f32 %v128_v40  ;;  %v102_v61 = vsel %vm100_vm3, 1.0, %v185_v31  ;;  %vm334_vm6 = vcmp.lt.f32.partialorder %v94_v46, 0.0004427343  ;;  %v133_v7 = vmul.f32 %v187_v34, %v132_v51 }
  0x28   :  { %v189_v47 = vpop.eup %188  ;;  %vm135_vm7 = vcmp.lt.f32.partialorder %v134_v56, 0.0004427343 }
  0x29   :  { %v191_v52 = vpop.eup %190  ;;  %v81_v53 = vmul.f32 0.6931472, %v189_v47 }
  0x2a   :  { %v193_v57 = vpop.eup %192  ;;  %v107_v58 = vmul.f32 %v191_v52, %v101_v45 }
  0x2b   :  { %v195_v62 = vpop.eup %194  ;;  %v87_v63 = vsel %vm319_vm4, %v84_v44, %v81_v53  ;;  %v121_v0 = vmul.f32 0.6931472, %v193_v57 }
  0x2c   :  { %v197_v3 = vpop.eup %196  ;;  %v141_v4 = vmul.f32 %v139_v50, %v107_v58  ;;  %v90_v6 = vmul.f32 0.6931472, %v195_v62  ;;  %v97_v12 = vadd.f32 %v87_v63, %v77_v48 }
  0x2d   :  { %v199_v8 = vpop.eup %198  ;;  %v127_v9 = vsel %vm326_vm5, %v124_v55, %v121_v0  ;;  %v108_v10 = vmul.f32 %v197_v3, %v102_v61 }
  0x2e   :  { %v137_v15 = vadd.f32 %v127_v9, %v109_v54  ;;  %v96_v16 = vsel %vm334_vm6, %v93_v60, %v90_v6  ;;  %v130_v17 = vmul.f32 0.6931472, %v199_v8 }
  0x2f   :  { %v142_v18 = vmul.f32 %v140_v2, %v108_v10  ;;  %v98_v14 = vadd.f32 %v96_v16, %v78_v5 }
  0x30   :  { %v143_v19 = vadd.f32 %v141_v4, %v137_v15  ;;  %v136_v20 = vsel %vm135_vm7, %v133_v7, %v130_v17 }
  0x31   :  { %v138_v21 = vadd.f32 %v136_v20, %v110_v11 }
  0x32   :  { %v145_v22 = vsub.f32 %v143_v19, %v97_v12 }
  0x33   :  { %v144_v23 = vadd.f32 %v142_v18, %v138_v21 }
  0x34   :  { %151 = vst [vmem:[#allocation7] sm:$0xff] %v145_v22 }
  0x35   :  { %v146_v13 = vsub.f32 %v144_v23, %v98_v14 }
  0x37   :  { %v150_v25 = vadd.f32 %v148_v24, %v146_v13 }
  0x39   :  { %153 = vst.msk [vmem:[#allocation7 + $0x8] sm:$0xff] %vm45_vm0, %v150_v25 }
  0x3a   :  { %164 = dma.vmem_to_hbm [thread:$0]  %s160_s1, 256, %s162_s21, [#allocation4]  }
  0x3b   :  { %276 = dma.done.wait [#allocation4], 256  }
  0x3c   :  { %277 = vsyncadd [#allocation4], 4294967040 }
  0x3d   :  { %169 = vsyncpa [#allocation3], 1 }
  0x3e   :  { %170 = vsyncpa [#allocation6], 1 }
  0x3f   :  { %171 = vsyncpa [#allocation4], 1 }

</bundles_post_ra>
